<compile_context>
chip_gen: v5e
topology: v5e:2x2
jax: 0.10.0
libtpu: 0.0.40
codegen_flags: <defaults>
</compile_context>

<pallas_src>
import jax
import jax.numpy as jnp
from jax.experimental import pallas as pl
from jax.experimental.pallas import tpu as pltpu

_LANE = 128        # vreg lane width
_TILE_ROWS = 16    # batch-tile row granularity (covers f32's 8 and bf16's 16 sublane packing)


def _round_up(x, m):
    return ((x + m - 1) // m) * m


# --------------------------------------------------------------------------- #
# Kernel                                                                       #
# --------------------------------------------------------------------------- #
def _decoder_mlp_kernel(sig_ref, lat_ref,
                        w1s_ref, w1l_ref, b1_ref,
                        w2_ref, b2_ref,
                        w3_ref, b3_ref,
                        out_ref):
    """One batch tile of relu(x@W1+b1) -> relu(.@W2+b2) -> .@W3+b3.

    The input concat is fused as two partial matmuls against the split W1
    (bf16 MXU, f32 accumulation, f32 bias/ReLU epilogue, bf16 store)."""
    sig = sig_ref[...].astype(jnp.bfloat16)
    lat = lat_ref[...].astype(jnp.bfloat16)

    # Layer 1: fused concat -> signal rows + latent rows of W1.
    h1 = jnp.dot(sig, w1s_ref[...], preferred_element_type=jnp.float32)
    h1 = h1 + jnp.dot(lat, w1l_ref[...], preferred_element_type=jnp.float32)
    h1 = jnp.maximum(h1 + b1_ref[...], 0.0).astype(jnp.bfloat16)

    # Layer 2.
    h2 = jnp.dot(h1, w2_ref[...], preferred_element_type=jnp.float32)
    h2 = jnp.maximum(h2 + b2_ref[...], 0.0).astype(jnp.bfloat16)

    # Layer 3 (no activation). 128-lane-dense block, bf16 store -> cheap vst.
    out = jnp.dot(h2, w3_ref[...], preferred_element_type=jnp.float32)
    out_ref[...] = (out + b3_ref[...]).astype(out_ref.dtype)


# --------------------------------------------------------------------------- #
# Parameter packing                                                            #
# --------------------------------------------------------------------------- #
def pack_params(params, num_belief_states):
    """Raw f32 [in, out] params -> kernel-ready tensors: pad hidden/out dims to
    128 lanes, split W1 at the concat boundary, cast weights to bf16 (MXU
    native), keep biases f32 for the f32 epilogue."""
    w1, b1 = params["w1"], params["b1"]
    w2, b2 = params["w2"], params["b2"]
    w3, b3 = params["w3"], params["b3"]

    hidden = w1.shape[1]
    out_dim = w3.shape[1]
    h_pad = _round_up(hidden, _LANE)
    o_pad = _round_up(out_dim, _LANE)

    def pad2(a, rows, cols):
        return jnp.pad(a, ((0, rows - a.shape[0]), (0, cols - a.shape[1])))

    w1p = pad2(w1, w1.shape[0], h_pad).astype(jnp.bfloat16)
    return {
        "w1_sig": w1p[:num_belief_states],
        "w1_lat": w1p[num_belief_states:],
        "b1": pad2(b1, 1, h_pad).astype(jnp.float32),
        "w2": pad2(w2, h_pad, h_pad).astype(jnp.bfloat16),
        "b2": pad2(b2, 1, h_pad).astype(jnp.float32),
        "w3": pad2(w3, h_pad, o_pad).astype(jnp.bfloat16),
        "b3": pad2(b3, 1, o_pad).astype(jnp.float32),
    }


# --------------------------------------------------------------------------- #
# Tiling / VMEM helpers                                                        #
# --------------------------------------------------------------------------- #
def _pick_batch_tile(B, *, block_b=1024, target_grid=8):
    """Choose the batch tile:
      - big (up to `block_b`=1024 rows) to amortize per-grid-step overhead,
      - but split into ~`target_grid` steps so v7x's two TensorCores both get
        work on the "parallel" grid axis,
      - and balanced across the grid so the last tile is not mostly padding."""
    B = max(int(B), 1)
    n_steps = max(pl.cdiv(B, block_b), min(target_grid, pl.cdiv(B, _TILE_ROWS)))
    tm = min(block_b, _round_up(pl.cdiv(B, n_steps), _TILE_ROWS))
    return tm


def _vmem_limit_bytes(tm, nb, ld, h_pad, o_pad, out_itemsize):
    """Explicit scoped-VMEM budget (important on v5e's 16 MiB default)."""
    weights = ((nb + ld) * h_pad + h_pad * h_pad + h_pad * o_pad) * 2   # bf16
    biases = (2 * h_pad + o_pad) * 4                                    # f32
    stream = tm * (nb + ld) * 4 + tm * o_pad * out_itemsize             # per step
    need = 2 * (weights + biases + stream)                              # double buffers
    return int(min(max(4 << 20, 4 * need), 64 << 20))


# --------------------------------------------------------------------------- #
# Forward wrappers                                                             #
# --------------------------------------------------------------------------- #
def _decoder_forward_jnp(signal, latent, packed, out_dim, out_dtype=jnp.bfloat16):
    """Plain-XLA MLP with identical (bf16 weight / f32 accumulate) numerics.
    Used as the tiny-batch fast path and as the correctness reference."""
    x = jnp.concatenate([signal, latent], axis=1).astype(jnp.bfloat16)
    w1 = jnp.concatenate([packed["w1_sig"], packed["w1_lat"]], axis=0)
    h1 = jnp.maximum(
        jnp.dot(x, w1, preferred_element_type=jnp.float32) + packed["b1"], 0.0
    ).astype(jnp.bfloat16)
    h2 = jnp.maximum(
        jnp.dot(h1, packed["w2"], preferred_element_type=jnp.float32) + packed["b2"], 0.0
    ).astype(jnp.bfloat16)
    out = jnp.dot(h2, packed["w3"], preferred_element_type=jnp.float32) + packed["b3"]
    return out[:, :out_dim].astype(out_dtype)


def _fix_dims(signal, latent):
    """Replicate the PyTorch dim fixups (with a shape assert on the 3-D squeeze)."""
    if latent.ndim == 3:
        assert latent.shape[0] == 1, (
            f"3-D latent must have a singleton leading axis, got {latent.shape}")
        latent = jnp.squeeze(latent, axis=0)
    if latent.ndim == 1:
        latent = latent[None, :]
    if signal.ndim == 1:
        signal = signal[None, :]
    return signal.astype(jnp.float32), latent.astype(jnp.float32)


def decoder_forward(signal, latent, packed, out_dim, *,
                    block_b=1024, target_grid=8,
                    min_pallas_batch=64,
                    out_dtype=jnp.bfloat16,
                    slice_output=True):
    """JAX wrapper mirroring DecoderNetwork.forward semantics.

    slice_output=False returns the padded (b_pad, 128) bf16 block so a
    downstream consumer can fuse the slice and avoid an extra full HBM pass
    over the padded output."""
    signal, latent = _fix_dims(signal, latent)
    B, nb = signal.shape
    ld = latent.shape[1]
    h_pad = packed["w2"].shape[0]
    o_pad = packed["w3"].shape[1]

    # Tiny batches: the fixed kernel launch + DMA pipeline setup dwarfs the
    # work; a fused XLA MLP is faster and avoids the padded-output write.
    if B < min_pallas_batch:
        return _decoder_forward_jnp(signal, latent, packed, out_dim, out_dtype)

    tm = _pick_batch_tile(B, block_b=block_b, target_grid=target_grid)
    b_pad = _round_up(B, tm)
    if b_pad != B:
        signal = jnp.pad(signal, ((0, b_pad - B), (0, 0)))
        latent = jnp.pad(latent, ((0, b_pad - B), (0, 0)))

    # Whole-array block + constant index_map => weight stays resident in VMEM.
    def resident(a):
        return pl.BlockSpec(a.shape, lambda i, _nd=a.ndim: (0,) * _nd)

    out_itemsize = jnp.dtype(out_dtype).itemsize
    vmem_limit = _vmem_limit_bytes(tm, nb, ld, h_pad, o_pad, out_itemsize)

    out = pl.pallas_call(
        _decoder_mlp_kernel,
        out_shape=jax.ShapeDtypeStruct((b_pad, o_pad), out_dtype),
        grid=(b_pad // tm,),
        in_specs=[
            pl.BlockSpec((tm, nb), lambda i: (i, 0)),   # signal tile streams
            pl.BlockSpec((tm, ld), lambda i: (i, 0)),   # latent tile streams
            resident(packed["w1_sig"]),
            resident(packed["w1_lat"]),
            resident(packed["b1"]),
            resident(packed["w2"]),
            resident(packed["b2"]),
            resident(packed["w3"]),
            resident(packed["b3"]),
        ],
        out_specs=pl.BlockSpec((tm, o_pad), lambda i: (i, 0)),
        compiler_params=pltpu.CompilerParams(
            dimension_semantics=("parallel",),          # megacore sharding on v7x
            vmem_limit_bytes=vmem_limit,                # explicit budget (v5e default is 16 MiB)
        ),
    )(signal, latent,
      packed["w1_sig"], packed["w1_lat"], packed["b1"],
      packed["w2"], packed["b2"], packed["w3"], packed["b3"])

    if not slice_output:
        return out          # padded (b_pad, o_pad) block; consumer fuses the slice
    # NOTE: for large B prefer slice_output=False — XLA materializes this slice
    # as a separate pass over the padded output.
    return out[:B, :out_dim]


# --------------------------------------------------------------------------- #
# Parameter init (matches the PyTorch module)                                  #
# --------------------------------------------------------------------------- #
def init_params(key, num_belief_states, latent_dim, hidden_dim,
                action_dim, num_agents):
    """Raw f32 params matching the PyTorch module (weights stored as [in, out]).

    Weights: xavier_normal_ (std = sqrt(2 / (fan_in + fan_out))).
    Biases: PyTorch nn.Linear default U(-1/sqrt(fan_in), 1/sqrt(fan_in))."""
    input_dim = num_belief_states + latent_dim
    out_dim = action_dim * num_agents
    ks = jax.random.split(key, 6)

    def xavier(k, fan_in, fan_out):
        std = (2.0 / (fan_in + fan_out)) ** 0.5
        return std * jax.random.normal(k, (fan_in, fan_out), dtype=jnp.float32)

    def bias(k, fan_in, fan_out):
        bound = 1.0 / (fan_in ** 0.5)
        return jax.random.uniform(k, (1, fan_out), dtype=jnp.float32,
                                  minval=-bound, maxval=bound)

    return {
        "w1": xavier(ks[0], input_dim, hidden_dim),
        "b1": bias(ks[1], input_dim, hidden_dim),
        "w2": xavier(ks[2], hidden_dim, hidden_dim),
        "b2": bias(ks[3], hidden_dim, hidden_dim),
        "w3": xavier(ks[4], hidden_dim, out_dim),
        "b3": bias(ks[5], hidden_dim, out_dim),
    }


# --------------------------------------------------------------------------- #
# Demo / self-test                                                             #
# --------------------------------------------------------------------------- #
if __name__ == "__main__":
    # Small, module-consistent shapes.
    batch = 2
    num_belief_states = 8   # == observation_dim
    latent_dim = 8
    hidden_dim = 32
    action_dim = 4
    num_agents = 3
    out_dim = action_dim * num_agents

    key = jax.random.PRNGKey(0)
    k_sig, k_lat, k_params, k_sig2, k_lat2 = jax.random.split(key, 5)

    params = init_params(k_params, num_belief_states, latent_dim, hidden_dim,
                         action_dim, num_agents)
    packed = pack_params(params, num_belief_states)

    def check(B, k_s, k_l, **fw_kwargs):
        signal = jax.random.normal(k_s, (B, num_belief_states), jnp.float32)
        latent = jax.random.normal(k_l, (B, latent_dim), jnp.float32)
        logits = decoder_forward(signal, latent, packed, out_dim, **fw_kwargs)
        jax.block_until_ready(logits)
        ref = _decoder_forward_jnp(signal, latent, packed, out_dim)
        assert logits.shape == (B, out_dim), (logits.shape, (B, out_dim))
        assert jnp.allclose(logits.astype(jnp.float32), ref.astype(jnp.float32),
                            atol=2e-2, rtol=2e-2), f"mismatch vs reference (B={B})"

    # 1) Small demo batch — force the Pallas path (production callers would hit
    #    the plain-jnp fallback for batches this small).
    check(batch, k_sig, k_lat, min_pallas_batch=0)

    # 2) Awkward larger batch — exercises the balanced multi-step grid (several
    #    "parallel" steps so both v7x TensorCores get work).
    check(300, k_sig2, k_lat2)

    print("KERNEL_OK")
</pallas_src>

<mosaic_0001>
module attributes {stable_mosaic.version = 11 : i64} {
  func.func @_decoder_mlp_kernel(%arg0: i32, %arg1: memref<16x8xf32, #tpu.memory_space<vmem>>, %arg2: memref<16x8xf32, #tpu.memory_space<vmem>>, %arg3: memref<8x128xbf16, #tpu.memory_space<vmem>>, %arg4: memref<8x128xbf16, #tpu.memory_space<vmem>>, %arg5: memref<1x128xf32, #tpu.memory_space<vmem>>, %arg6: memref<128x128xbf16, #tpu.memory_space<vmem>>, %arg7: memref<1x128xf32, #tpu.memory_space<vmem>>, %arg8: memref<128x128xbf16, #tpu.memory_space<vmem>>, %arg9: memref<1x128xf32, #tpu.memory_space<vmem>>, %arg10: memref<16x128xbf16, #tpu.memory_space<vmem>>) attributes {dimension_semantics = [#tpu.dimension_semantics<parallel>], iteration_bounds = array<i64: 1>, scalar_prefetch = 0 : i64, scratch_operands = 0 : i64, tpu.core_type = #tpu.core_type<tc>, window_params = [{transform_indices = @transform_0, window_bounds = array<i64: 16, 8>}, {transform_indices = @transform_1, window_bounds = array<i64: 16, 8>}, {pipeline_mode = #tpu.pipeline_mode<synchronous>, transform_indices = @transform_2, window_bounds = array<i64: 8, 128>}, {pipeline_mode = #tpu.pipeline_mode<synchronous>, transform_indices = @transform_3, window_bounds = array<i64: 8, 128>}, {pipeline_mode = #tpu.pipeline_mode<synchronous>, transform_indices = @transform_4, window_bounds = array<i64: 1, 128>}, {pipeline_mode = #tpu.pipeline_mode<synchronous>, transform_indices = @transform_5, window_bounds = array<i64: 128, 128>}, {pipeline_mode = #tpu.pipeline_mode<synchronous>, transform_indices = @transform_6, window_bounds = array<i64: 1, 128>}, {pipeline_mode = #tpu.pipeline_mode<synchronous>, transform_indices = @transform_7, window_bounds = array<i64: 128, 128>}, {pipeline_mode = #tpu.pipeline_mode<synchronous>, transform_indices = @transform_8, window_bounds = array<i64: 1, 128>}, {transform_indices = @transform_9, window_bounds = array<i64: 16, 128>}]} {
    %c0 = arith.constant 0 : index
    %c0_0 = arith.constant 0 : index
    %0 = vector.load %arg1[%c0, %c0_0] : memref<16x8xf32, #tpu.memory_space<vmem>>, vector<16x8xf32>
    %1 = arith.truncf %0 : vector<16x8xf32> to vector<16x8xbf16>
    %c0_1 = arith.constant 0 : index
    %c0_2 = arith.constant 0 : index
    %2 = vector.load %arg2[%c0_1, %c0_2] : memref<16x8xf32, #tpu.memory_space<vmem>>, vector<16x8xf32>
    %3 = arith.truncf %2 : vector<16x8xf32> to vector<16x8xbf16>
    %c0_3 = arith.constant 0 : index
    %c0_4 = arith.constant 0 : index
    %4 = vector.load %arg3[%c0_3, %c0_4] : memref<8x128xbf16, #tpu.memory_space<vmem>>, vector<8x128xbf16>
    %cst = arith.constant dense<0.000000e+00> : vector<16x128xf32>
    %5 = tpu.matmul %1, %4, %cst {dimension_numbers = #tpu.dot_dimension_numbers<[1], [0], [0], [1], [0, 0, 1, 1], [], []>} : vector<16x8xbf16>, vector<8x128xbf16>, vector<16x128xf32> -> vector<16x128xf32>
    %c0_5 = arith.constant 0 : index
    %c0_6 = arith.constant 0 : index
    %6 = vector.load %arg4[%c0_5, %c0_6] : memref<8x128xbf16, #tpu.memory_space<vmem>>, vector<8x128xbf16>
    %cst_7 = arith.constant dense<0.000000e+00> : vector<16x128xf32>
    %7 = tpu.matmul %3, %6, %cst_7 {dimension_numbers = #tpu.dot_dimension_numbers<[1], [0], [0], [1], [0, 0, 1, 1], [], []>} : vector<16x8xbf16>, vector<8x128xbf16>, vector<16x128xf32> -> vector<16x128xf32>
    %8 = arith.addf %5, %7 : vector<16x128xf32>
    %c0_8 = arith.constant 0 : index
    %c0_9 = arith.constant 0 : index
    %9 = vector.load %arg5[%c0_8, %c0_9] : memref<1x128xf32, #tpu.memory_space<vmem>>, vector<1x128xf32>
    %10 = vector.broadcast %9 : vector<1x128xf32> to vector<16x128xf32>
    %11 = arith.addf %8, %10 : vector<16x128xf32>
    %cst_10 = arith.constant 0.000000e+00 : f32
    %12 = vector.broadcast %cst_10 : f32 to vector<16x128xf32>
    %13 = arith.maximumf %11, %12 : vector<16x128xf32>
    %14 = arith.truncf %13 : vector<16x128xf32> to vector<16x128xbf16>
    %c0_11 = arith.constant 0 : index
    %c0_12 = arith.constant 0 : index
    %15 = vector.load %arg6[%c0_11, %c0_12] : memref<128x128xbf16, #tpu.memory_space<vmem>>, vector<128x128xbf16>
    %cst_13 = arith.constant dense<0.000000e+00> : vector<16x128xf32>
    %16 = tpu.matmul %14, %15, %cst_13 {dimension_numbers = #tpu.dot_dimension_numbers<[1], [0], [0], [1], [0, 0, 1, 1], [], []>} : vector<16x128xbf16>, vector<128x128xbf16>, vector<16x128xf32> -> vector<16x128xf32>
    %c0_14 = arith.constant 0 : index
    %c0_15 = arith.constant 0 : index
    %17 = vector.load %arg7[%c0_14, %c0_15] : memref<1x128xf32, #tpu.memory_space<vmem>>, vector<1x128xf32>
    %18 = vector.broadcast %17 : vector<1x128xf32> to vector<16x128xf32>
    %19 = arith.addf %16, %18 : vector<16x128xf32>
    %cst_16 = arith.constant 0.000000e+00 : f32
    %20 = vector.broadcast %cst_16 : f32 to vector<16x128xf32>
    %21 = arith.maximumf %19, %20 : vector<16x128xf32>
    %22 = arith.truncf %21 : vector<16x128xf32> to vector<16x128xbf16>
    %c0_17 = arith.constant 0 : index
    %c0_18 = arith.constant 0 : index
    %23 = vector.load %arg8[%c0_17, %c0_18] : memref<128x128xbf16, #tpu.memory_space<vmem>>, vector<128x128xbf16>
    %cst_19 = arith.constant dense<0.000000e+00> : vector<16x128xf32>
    %24 = tpu.matmul %22, %23, %cst_19 {dimension_numbers = #tpu.dot_dimension_numbers<[1], [0], [0], [1], [0, 0, 1, 1], [], []>} : vector<16x128xbf16>, vector<128x128xbf16>, vector<16x128xf32> -> vector<16x128xf32>
    %c0_20 = arith.constant 0 : index
    %c0_21 = arith.constant 0 : index
    %25 = vector.load %arg9[%c0_20, %c0_21] : memref<1x128xf32, #tpu.memory_space<vmem>>, vector<1x128xf32>
    %26 = vector.broadcast %25 : vector<1x128xf32> to vector<16x128xf32>
    %27 = arith.addf %24, %26 : vector<16x128xf32>
    %28 = arith.truncf %27 : vector<16x128xf32> to vector<16x128xbf16>
    %c0_22 = arith.constant 0 : index
    %c0_23 = arith.constant 0 : index
    %29 = vector.load %arg10[%c0_22, %c0_23] : memref<16x128xbf16, #tpu.memory_space<vmem>>, vector<16x128xbf16>
    tpu.vector_store %arg10[%c0_22, %c0_23], %28 {strides = array<i32>} : memref<16x128xbf16, #tpu.memory_space<vmem>>, vector<16x128xbf16>,
    return
  }
  func.func @transform_0(%arg0: i32) -> (i32, i32) {
    %c0_i32 = arith.constant 0 : i32
    %c0_i32_0 = arith.constant 0 : i32
    return %arg0, %c0_i32 : i32, i32
  }
  func.func @transform_1(%arg0: i32) -> (i32, i32) {
    %c0_i32 = arith.constant 0 : i32
    %c0_i32_0 = arith.constant 0 : i32
    return %arg0, %c0_i32 : i32, i32
  }
  func.func @transform_2(%arg0: i32) -> (i32, i32) {
    %c0_i32 = arith.constant 0 : i32
    %c0_i32_0 = arith.constant 0 : i32
    %c0_i32_1 = arith.constant 0 : i32
    return %c0_i32, %c0_i32_0 : i32, i32
  }
  func.func @transform_3(%arg0: i32) -> (i32, i32) {
    %c0_i32 = arith.constant 0 : i32
    %c0_i32_0 = arith.constant 0 : i32
    %c0_i32_1 = arith.constant 0 : i32
    return %c0_i32, %c0_i32_0 : i32, i32
  }
  func.func @transform_4(%arg0: i32) -> (i32, i32) {
    %c0_i32 = arith.constant 0 : i32
    %c0_i32_0 = arith.constant 0 : i32
    %c0_i32_1 = arith.constant 0 : i32
    return %c0_i32, %c0_i32_0 : i32, i32
  }
  func.func @transform_5(%arg0: i32) -> (i32, i32) {
    %c0_i32 = arith.constant 0 : i32
    %c0_i32_0 = arith.constant 0 : i32
    %c0_i32_1 = arith.constant 0 : i32
    return %c0_i32, %c0_i32_0 : i32, i32
  }
  func.func @transform_6(%arg0: i32) -> (i32, i32) {
    %c0_i32 = arith.constant 0 : i32
    %c0_i32_0 = arith.constant 0 : i32
    %c0_i32_1 = arith.constant 0 : i32
    return %c0_i32, %c0_i32_0 : i32, i32
  }
  func.func @transform_7(%arg0: i32) -> (i32, i32) {
    %c0_i32 = arith.constant 0 : i32
    %c0_i32_0 = arith.constant 0 : i32
    %c0_i32_1 = arith.constant 0 : i32
    return %c0_i32, %c0_i32_0 : i32, i32
  }
  func.func @transform_8(%arg0: i32) -> (i32, i32) {
    %c0_i32 = arith.constant 0 : i32
    %c0_i32_0 = arith.constant 0 : i32
    %c0_i32_1 = arith.constant 0 : i32
    return %c0_i32, %c0_i32_0 : i32, i32
  }
  func.func @transform_9(%arg0: i32) -> (i32, i32) {
    %c0_i32 = arith.constant 0 : i32
    %c0_i32_0 = arith.constant 0 : i32
    return %arg0, %c0_i32 : i32, i32
  }
}

</mosaic_0001>

<bundles_post_ra>
// kernel: tpu_custom_call.1
= control target key start
LH: loop header
LB: loop body
LE: loop exit
PB: predicated region body
PF: predicated region fallthrough
CT: control target
= control target key end

     0   :  { %14 = vsyncpa [#allocation3], 0  ;;  %s589_s0 = inlined_call_operand.vmem [shape: f32[16,8], index: 0, kind: input, shape index: {}]   ;;  %s590_s1 = inlined_call_operand.vmem [shape: f32[16,8], index: 1, kind: input, shape index: {}]   ;;  %s591_s2 = inlined_call_operand.vmem [shape: bf16[8,128], index: 2, kind: input, shape index: {}]   ;;  %s592_s3 = inlined_call_operand.vmem [shape: bf16[8,128], index: 3, kind: input, shape index: {}]   ;;  %s593_s4 = inlined_call_operand.vmem [shape: f32[1,128], index: 4, kind: input, shape index: {}]   ;;  %s594_s5 = inlined_call_operand.hbm [shape: bf16[128,128], index: 5, kind: input, shape index: {}]   ;;  %s595_s6 = inlined_call_operand.vmem [shape: f32[1,128], index: 6, kind: input, shape index: {}]   ;;  %s596_s7 = inlined_call_operand.hbm [shape: bf16[128,128], index: 7, kind: input, shape index: {}]   ;;  %s597_s8 = inlined_call_operand.vmem [shape: f32[1,128], index: 8, kind: input, shape index: {}]   ;;  %s598_s9 = inlined_call_operand.hbm [shape: bf16[16,128], index: 9, kind: output, shape index: {}]  }
   0x1   :  { %15 = vsyncpa [#allocation6], 0 }
   0x2   :  { %16 = vsyncpa [#allocation4], 0  ;;  %s31_s11 = sshll.u32 %s594_s5, 4  ;;  %s489_s12 = smov [#allocation2]   ;;  %s32_s11 = int_to_ptr.hbm [resolvable:$true] %s31_s11 }
   0x3   :  { %s33_s13 = sshll.u32 %s489_s12, 4  ;;  %s46_s16 = sshll.u32 %s596_s7, 4  ;;  %s34_s13 = int_to_ptr.vmem [resolvable:$true] %s33_s13  ;;  %s47_s16 = int_to_ptr.hbm [resolvable:$true] %s46_s16 }
   0x4   :  { %s490_s17 = smov 64   ;;  %s491_s18 = smov 4  }
   0x5   :  { %39 = dma.hbm_to_vmem [thread:$0]  %s32_s11, 1024, %s34_s13, [#allocation3], %s490_s17, %s490_s17, %s491_s18  }
   0x6   :  { %s492_s19 = smov [#allocation5]  }
   0x7   :  { %s48_s20 = sshll.u32 %s492_s19, 4  ;;  %s49_s20 = int_to_ptr.vmem [resolvable:$true] %s48_s20 }
   0x8   :  { %54 = dma.hbm_to_vmem [thread:$0]  %s47_s16, 1024, %s49_s20, [#allocation6], %s490_s17, %s490_s17, %s491_s18  }
   0x9   :  { %483 = dma.done.wait [#allocation3], 1024  }
   0xa   :  { %484 = vsyncadd [#allocation3], 4294966272 }
   0xb   :  { %485 = dma.done.wait [#allocation6], 1024  }
   0xc   :  { %486 = vsyncadd [#allocation6], 4294966272  ;;  %vm78_vm0 = vcmask 1043456   ;;  %v73_v0 = vld [vmem:[%s592_s3] sm:$0xf]  ;;  %v70_v5 = vld [vmem:[%s590_s1 + $0x8] sm:$0xff] }
   0xd   :  { %v72_v1 = vld [vmem:[%s591_s2] sm:$0xf]  ;;  %v80_v3 = vsel %vm78_vm0, %v73_v0, 0  ;;  %v67_v7 = vld [vmem:[%s589_s0 + $0x8] sm:$0xff]  ;;  %vm74_vm1 = vcmask 64512   ;;  %v389_v10 = vld [vmem:[#allocation2 + $0x38] sm:$0xff] }
   0xe   :  { %v69_v2 = vld [vmem:[%s590_s1] sm:$0xff]  ;;  %v100_v4 = vsel %vm78_vm0, %v72_v1, 0  ;;  %89 = vmatpush.bf16.msra.mxu0 %v80_v3  ;;  %193 = vmatpush.bf16.msra.mxu2 %v389_v10  ;;  %v388_v11 = vld [vmem:[#allocation2 + $0x30] sm:$0xff]  ;;  %v387_v12 = vld [vmem:[#allocation2 + $0x28] sm:$0xff]  ;;  %s493_s11 = smov [#allocation7]   ;;  %s302_s15 = sshll.u32 %s598_s9, 4  ;;  %s303_s15 = int_to_ptr.hbm [resolvable:$true] %s302_s15 }
   0xf   :  { %v66_v6 = vld [vmem:[%s589_s0] sm:$0xff]  ;;  %109 = vmatpush.bf16.msra.mxu1 %v100_v4  ;;  %v71_v8 = vpack.c.bf16 %v70_v5, %v69_v2  ;;  %v385_v14 = vld [vmem:[#allocation2 + $0x18] sm:$0xff]  ;;  %v384_v15 = vld [vmem:[#allocation2 + $0x10] sm:$0xff]  ;;  %s300_s12 = sshll.u32 %s493_s11, 4  ;;  %s301_s12 = int_to_ptr.vmem [resolvable:$true] %s300_s12 }
  0x10   :  { %v68_v9 = vpack.c.bf16 %v67_v7, %v66_v6  ;;  %v386_v13 = vld [vmem:[#allocation2 + $0x20] sm:$0xff]  ;;  %v383_v16 = vld [vmem:[#allocation2 + $0x8] sm:$0xff]  ;;  %v397_v18 = vld [vmem:[#allocation5 + $0x38] sm:$0xff] }
  0x11   :  { %316 = vmatmul.msk.bf16.vlgmr.msra.gmra.mxu0 %vm74_vm1, %v71_v8  ;;  %v382_v17 = vld [vmem:[#allocation2] sm:$0xff]  ;;  %278 = vmatpush.bf16.msra.mxu3 %v397_v18  ;;  %v396_v19 = vld [vmem:[#allocation5 + $0x30] sm:$0xff]  ;;  %v395_v20 = vld [vmem:[#allocation5 + $0x28] sm:$0xff] }
  0x12   :  { %317 = vmatmul.msk.bf16.vlgmr.msra.gmra.mxu1 %vm74_vm1, %v68_v9  ;;  %194 = vmatpush.bf16.msra.mxu2 %v388_v11  ;;  %v394_v21 = vld [vmem:[#allocation5 + $0x20] sm:$0xff]  ;;  %v393_v34 = vld [vmem:[#allocation5 + $0x18] sm:$0xff]  ;;  %v392_v35 = vld [vmem:[#allocation5 + $0x10] sm:$0xff] }
  0x13   :  { %v408_v25 = vld [vmem:[%s593_s4] ss:$0 sm:$0xff]  ;;  %v391_v36 = vld [vmem:[#allocation5 + $0x8] sm:$0xff] }
  0x14   :  { %v390_v37 = vld [vmem:[#allocation5] sm:$0xff] }
  0x15   :  { %279 = vmatpush.bf16.msra.mxu3 %v396_v19  ;;  %v409_v39 = vld [vmem:[%s595_s6] ss:$0 sm:$0xff] }
  0x16   :  { %195 = vmatpush.bf16.msra.mxu2 %v387_v12  ;;  %v410_v47 = vld [vmem:[%s597_s8] ss:$0 sm:$0xff] }
  0x19   :  { %280 = vmatpush.bf16.msra.mxu3 %v395_v20 }
  0x1a   :  { %196 = vmatpush.bf16.msra.mxu2 %v386_v13 }
  0x1d   :  { %281 = vmatpush.bf16.msra.mxu3 %v394_v21 }
  0x1e   :  { %197 = vmatpush.bf16.msra.mxu2 %v385_v14 }
  0x21   :  { %282 = vmatpush.bf16.msra.mxu3 %v393_v34 }
  0x22   :  { %198 = vmatpush.bf16.msra.mxu2 %v384_v15 }
  0x25   :  { %283 = vmatpush.bf16.msra.mxu3 %v392_v35 }
  0x26   :  { %199 = vmatpush.bf16.msra.mxu2 %v383_v16 }
  0x29   :  { %284 = vmatpush.bf16.msra.mxu3 %v391_v36 }
  0x2a   :  { %200 = vmatpush.bf16.msra.mxu2 %v382_v17 }
  0x2d   :  { %285 = vmatpush.bf16.msra.mxu3 %v390_v37 }
  0x8e   :  { %v91_v22 = vpop.f32.mrf.mxu0 }
  0x8f   :  { %v111_v23 = vpop.f32.mrf.mxu1 }
  0x90   :  { %v112_v24 = vadd.f32 %v111_v23, %v91_v22 }
  0x92   :  { %v120_v28 = vadd.f32 %v408_v25, %v112_v24 }
  0x94   :  { %v122_v31 = vmax.f32 %v120_v28, 0.0 }
  0x96   :  { %v93_v26 = vpop.f32.mrf.mxu0 }
  0x97   :  { %v113_v27 = vpop.f32.mrf.mxu1 }
  0x98   :  { %v114_v29 = vadd.f32 %v113_v27, %v93_v26 }
  0x9a   :  { %v121_v30 = vadd.f32 %v408_v25, %v114_v29 }
  0x9c   :  { %v123_v32 = vmax.f32 %v121_v30, 0.0 }
  0x9e   :  { %v124_v33 = vpack.c.bf16 %v123_v32, %v122_v31 }
  0xa0   :  { %201 = vmatmul.bf16.vlgmr.msra.gmra.mxu2 %v124_v33 }
 0x123   :  { %v202_v38 = vpop.f32.mrf.mxu2 }
 0x124   :  { %v203_v40 = vadd.f32 %v409_v39, %v202_v38 }
 0x126   :  { %v207_v43 = vmax.f32 %v203_v40, 0.0 }
 0x12b   :  { %v204_v41 = vpop.f32.mrf.mxu2 }
 0x12c   :  { %v205_v42 = vadd.f32 %v409_v39, %v204_v41 }
 0x12e   :  { %v208_v44 = vmax.f32 %v205_v42, 0.0 }
 0x130   :  { %v209_v45 = vpack.c.bf16 %v208_v44, %v207_v43 }
 0x132   :  { %286 = vmatmul.bf16.vlgmr.msra.gmra.mxu3 %v209_v45 }
 0x1b5   :  { %v287_v46 = vpop.f32.mrf.mxu3 }
 0x1b6   :  { %v288_v49 = vadd.f32 %v410_v47, %v287_v46 }
 0x1bd   :  { %v289_v48 = vpop.f32.mrf.mxu3 }
 0x1be   :  { %v290_v50 = vadd.f32 %v410_v47, %v289_v48 }
 0x1c0   :  { %v401_v51 = vpack.c.bf16 %v290_v50, %v288_v49 }
 0x1c2   :  { %402 = vst [vmem:[#allocation7] sm:$0xff] %v401_v51  }
 0x1c3   :  { %308 = dma.vmem_to_hbm [thread:$0]  %s301_s12, 128, %s303_s15, [#allocation4], %s490_s17, %s490_s17, %s491_s18  }
 0x1c4   :  { %487 = dma.done.wait [#allocation4], 128  }
 0x1c5   :  { %488 = vsyncadd [#allocation4], 4294967168 }
 0x1c6   :  { %313 = vsyncpa [#allocation3], 1 }
 0x1c7   :  { %314 = vsyncpa [#allocation6], 1 }
 0x1c8   :  { %315 = vsyncpa [#allocation4], 1 }

</bundles_post_ra>
